<compile_context>
chip_gen: v5e
topology: v5e:2x2
jax: 0.10.0
libtpu: 0.0.40
codegen_flags: <defaults>
</compile_context>

<pallas_src>
import math

import jax
import jax.numpy as jnp
from jax.experimental import pallas as pl
from jax.experimental.pallas import tpu as pltpu

OUT_H = 98                                                  # output_height
PAD_ROWS = 2 ** math.ceil(math.log2(OUT_H + 1)) - OUT_H     # = 30
OUT_W = OUT_H + PAD_ROWS                                    # = 128 (lane-dense)
MAX_TILE_ROWS = 4096                                        # amortize per-step overhead (v7x)


def _cdiv(a, b):
    return -(-a // b)


def _round_up(x, m):
    return (x + m - 1) // m * m


def _pad_scale_cast_kernel(x_ref, o_ref):
    # x_ref: (tile, 128) input block; lanes [0, 98) are valid W-flipped data,
    #        lanes [98, 128) are partial-block padding (masked off below).
    # o_ref: (tile, 128) int32 output block.
    col = jax.lax.broadcasted_iota(jnp.int32, o_ref.shape, 1)
    # x *= 8 ; x = x.int()   (float->int32 truncates toward zero, same as torch)
    vals = (x_ref[...].astype(jnp.float32) * 8.0).astype(jnp.int32)
    # Single unmasked full-width store: valid lanes get the scaled values,
    # lanes >= 98 get the zero pad (and mask out the garbage tail lanes).
    o_ref[...] = jnp.where(col < OUT_H, vals, 0)


def flip_and_pad(x_nhwc):
    """x_nhwc: (N, H, W=98, C) float -> (N, C, H, 128) int32."""
    N, H, W, C = x_nhwc.shape
    assert W == OUT_H, f"expected W == {OUT_H}, got {W}"

    # Glue (fused by XLA into the single transpose copy under jit):
    # permute(0,3,1,2), reverse W (the index_select), flatten leading dims.
    # Keep the native dtype (bf16 stays bf16); the kernel casts in-register.
    x_nchw = jnp.transpose(x_nhwc, (0, 3, 1, 2))
    x_flip = jnp.flip(x_nchw, axis=-1)          # index_select(., 3, arange(97,-1,-1))
    rows = x_flip.reshape(N * C * H, W)

    R = rows.shape[0]
    # Tile selection: as large as possible (amortize ~0.35 us/step), but always
    # targeting >= 2 grid steps so the 'parallel' axis can shard across v7x's
    # two TensorCores.  Multiple of 16 keeps sublane alignment for f32/bf16.
    tile = min(MAX_TILE_ROWS, _round_up(_cdiv(R, 2), 16))
    grid = _cdiv(R, tile)   # ragged last block handled by Pallas (OOB stores dropped)

    out_rows = pl.pallas_call(
        _pad_scale_cast_kernel,
        out_shape=jax.ShapeDtypeStruct((R, OUT_W), jnp.int32),
        grid_spec=pltpu.PrefetchScalarGridSpec(
            num_scalar_prefetch=0,
            grid=(grid,),
            # Input block spans the full 128-lane width of the 98-wide array:
            # one partial block in the lane dim, only 98 columns of HBM read.
            in_specs=[pl.BlockSpec((tile, OUT_W), lambda i: (i, 0))],
            out_specs=pl.BlockSpec((tile, OUT_W), lambda i: (i, 0)),
        ),
        compiler_params=pltpu.CompilerParams(
            dimension_semantics=("parallel",),   # shards grid across TCs on v7x
            vmem_limit_bytes=32 << 20,           # ~8 MiB needed at tile=4096, f32
        ),
    )(rows)

    return out_rows.reshape(N, C, H, OUT_W)


def inner_model(x):
    # TODO(synk): FlipAndPad wraps an arbitrary external model; identity here.
    return x


@jax.jit
def flip_and_pad_module(x):
    return flip_and_pad(inner_model(x))


if __name__ == "__main__":
    key = jax.random.PRNGKey(0)
    N, H, W, C = 2, 4, OUT_H, 3           # inner-model output shape (N, H, 98, C)
    x = jax.random.normal(key, (N, H, W, C), dtype=jnp.float32) * 4.0

    out = jax.block_until_ready(flip_and_pad_module(x))

    # pure-JAX reference for correctness
    x_nchw = jnp.transpose(x, (0, 3, 1, 2))
    flipped = jnp.flip(x_nchw, axis=-1)
    padded = jnp.concatenate(
        [flipped, jnp.zeros((N, C, H, PAD_ROWS), jnp.float32)], axis=-1
    )
    ref = (padded * 8.0).astype(jnp.int32)

    assert out.shape == (N, C, H, OUT_W), out.shape
    assert out.dtype == jnp.int32, out.dtype
    assert bool(jnp.all(out == ref)), "mismatch vs reference"

    print("KERNEL_OK")
</pallas_src>

<mosaic_0001>
module attributes {stable_mosaic.version = 11 : i64} {
  func.func @_pad_scale_cast_kernel(%arg0: i32, %arg1: memref<16x128xf32, #tpu.memory_space<vmem>>, %arg2: memref<16x128xi32, #tpu.memory_space<vmem>>) attributes {dimension_semantics = [#tpu.dimension_semantics<parallel>], iteration_bounds = array<i64: 2>, scalar_prefetch = 0 : i64, scratch_operands = 0 : i64, tpu.core_type = #tpu.core_type<tc>, window_params = [{transform_indices = @transform_0, window_bounds = array<i64: 16, 128>}, {transform_indices = @transform_1, window_bounds = array<i64: 16, 128>}]} {
    %0 = tpu.iota {dimensions = array<i32: 1>} : vector<16x128xi32>
    %c0 = arith.constant 0 : index
    %c0_0 = arith.constant 0 : index
    %1 = vector.load %arg1[%c0, %c0_0] : memref<16x128xf32, #tpu.memory_space<vmem>>, vector<16x128xf32>
    %cst = arith.constant 8.000000e+00 : f32
    %2 = vector.broadcast %cst : f32 to vector<16x128xf32>
    %3 = arith.mulf %1, %2 : vector<16x128xf32>
    %4 = arith.fptosi %3 : vector<16x128xf32> to vector<16x128xi32>
    %c98_i32 = arith.constant 98 : i32
    %5 = vector.broadcast %c98_i32 : i32 to vector<16x128xi32>
    %6 = arith.cmpi slt, %0, %5 : vector<16x128xi32>
    %c0_i32 = arith.constant 0 : i32
    %7 = vector.broadcast %c0_i32 : i32 to vector<16x128xi32>
    %8 = arith.select %6, %4, %7 : vector<16x128xi1>, vector<16x128xi32>
    %c0_1 = arith.constant 0 : index
    %c0_2 = arith.constant 0 : index
    %9 = vector.load %arg2[%c0_1, %c0_2] : memref<16x128xi32, #tpu.memory_space<vmem>>, vector<16x128xi32>
    tpu.vector_store %arg2[%c0_1, %c0_2], %8 {strides = array<i32>} : memref<16x128xi32, #tpu.memory_space<vmem>>, vector<16x128xi32>,
    return
  }
  func.func @transform_0(%arg0: i32) -> (i32, i32) {
    %c0_i32 = arith.constant 0 : i32
    %c0_i32_0 = arith.constant 0 : i32
    return %arg0, %c0_i32 : i32, i32
  }
  func.func @transform_1(%arg0: i32) -> (i32, i32) {
    %c0_i32 = arith.constant 0 : i32
    %c0_i32_0 = arith.constant 0 : i32
    return %arg0, %c0_i32 : i32, i32
  }
}

</mosaic_0001>

<bundles_post_ra>
// kernel: flip_and_pad_module.1
= control target key start
LH: loop header
LB: loop body
LE: loop exit
PB: predicated region body
PF: predicated region fallthrough
CT: control target
= control target key end

     0   :  { %6 = vsyncpa [#allocation3], 0  ;;  %s512_s0 = inlined_call_operand.vmem [shape: f32[24,98], index: 0, kind: input, shape index: {}]   ;;  %s513_s1 = inlined_call_operand.hbm [shape: s32[24,128], index: 1, kind: output, shape index: {}]  }
   0x1   :  { %8 = vsyncpa [#allocation3 + $0x1], 0  ;;  %s395_s6 = smov 0   ;;  %s397_s7 = smov 0  }
   0x2   :  { %s399_s8 = smov 0   ;;  %s401_s9 = smov 0  }
   0x3 LB: > { %s416_s10 = sadd.s32 4294967295, %s380_s9   ;;  %s240_s11 = sadd.s32 4294967294, %s380_s9   ;;  %s380_s9 = sphi %s401_s9, %s520_s9   ;;  %s376_s8 = sphi %s399_s8, %s519_s8   ;;  %s372_s7 = sphi %s397_s7, %s518_s7   ;;  %s368_s6 = sphi %s395_s6, %s517_s6  }
   0x4   : > { %s420_s12 = sadd.s32 1, %s380_s9   ;;  %s47_s13 = sadd.s32 1, %s376_s8 }
   0x5   : > { %s44_s14 = ssub.s32 %s380_s9, %s420_s12  ;;  %p57_p0 = scmp.ne.s32.totalorder %s376_s8, %s372_s7 }
   0x6   : > { %p45_p1 = scmp.eq.s32.totalorder %s44_s14, 0  ;;  %p58_p2 = scmp.eq.s32.totalorder %s416_s10, 1 }
   0x7   : > { %p63_p3 = scmp.ne.s32.totalorder %s372_s7, %s368_s6  ;;  %p64_p4 = scmp.eq.s32.totalorder %s240_s11, 1 }
   0x8   : > { %s431_s15 = scalar_select %p45_p1, %s376_s8, %s47_s13  }
   0x9   : > { %p433_p5 = por %p58_p2, %p57_p0  ;;  %p437_p6 = por %p64_p4, %p63_p3 }
   0xa   : > { %p243_p7 = scmp.ge.s32.totalorder %s380_s9, 1  ;;  %p99_p8 = scmp.lt.s32.totalorder %s380_s9, 3 }
   0xc   : > { %p100_p9 = pnand %p243_p7, %p99_p8 }
   0xd   : > { %s444_s18 = sshll.u32 (!%p100_p9), %s416_s10, 1  ;;  %s120_s19 = sand.u32 (!%p100_p9), 1, %s372_s7  }
   0xe   : > { %103 = sbr.rel (%p100_p9) target bundleno = 65 (0x41), region = 24  ;;  %p128_p10 = scmp.lt.s32.totalorder (!%p100_p9), %s444_s18, 2 }
   0xf   : > { %s244_s25 = sshll.u32 (!%p100_p9), %s120_s19, 4  ;;  %s452_s27 = scalar_lea.sflag (!%p100_p9), [#allocation3], %s120_s19 }
  0x10   : > { %s122_s26 = scalar_lea.vmem (!%p100_p9), [#allocation2], %s244_s25 }
  0x13   : > { %s129_s20 = scalar_select %p128_p10, %s444_s18, 2  ;;  %v142_v0 = vlaneseq }
  0x14   : > { %s164_s28 = ssub.s32 (%p433_p5), 3, %s444_s18 }
  0x15   : > { %s246_s21 = sshll.u32 %s129_s20, 3  ;;  %v143_v3 = vand.u32 127, %v142_v0  ;;  %p165_p11 = scmp.lt.s32.totalorder (%p433_p5), %s164_s28, 2 }
  0x16   : > { %s131_s24 = scalar_lea.vmem %s512_s0, %s246_s21 }
  0x17   : > { %v144_v1 = vld [vmem:[%s131_s24] sm:$0xff]  ;;  %v145_v2 = vld [vmem:[%s131_s24 + $0x8] sm:$0xff]  ;;  %vm150_vm2 = vcmp.lt.s32.totalorder %v143_v3, 98 }
  0x18   : > { %v146_v4 = vmul.f32 8.0, %v144_v1  ;;  %v147_v5 = vmul.f32 8.0, %v145_v2 }
  0x1a   : > { %vm257_vm0 = vcmp.lt.s32.totalorder %v146_v4, 0  ;;  %v258_v6 = vceil.f32 %v146_v4  ;;  %v259_v7 = vfloor.f32 %v146_v4  ;;  %vm262_vm1 = vcmp.lt.s32.totalorder %v147_v5, 0 }
  0x1b   : > { %v263_v8 = vceil.f32 %v147_v5  ;;  %v264_v9 = vfloor.f32 %v147_v5 }
  0x1c   : > { %v260_v10 = vsel %vm257_vm0, %v258_v6, %v259_v7 }
  0x1d   : > { %v261_v11 = vcvt.f32.s32 %v260_v10  ;;  %v265_v12 = vsel %vm262_vm1, %v263_v8, %v264_v9  ;;  %162 = sbr.rel (!%p433_p5) target bundleno = 65 (0x41), region = 28 }
  0x1e   : > { %v266_v13 = vcvt.f32.s32 %v265_v12 }
  0x1f   : > { %v151_v14 = vsel %vm150_vm2, %v261_v11, 0 }
  0x20   : > { %153 = vst [vmem:[%s122_s26] sm:$0xff] %v151_v14  ;;  %v152_v15 = vsel %vm150_vm2, %v266_v13, 0 }
  0x21   : > { %154 = vst [vmem:[%s122_s26 + $0x8] sm:$0xff] %v152_v15 }
  0x22   : > { %s522_s28 = smov (!%p165_p11, %s164_s28), 2 }
  0x23   : > { %s249_s29 = sshll.u32 %s522_s28, 3 }
  0x24   : > { %s168_s30 = ssub.s32 16, %s249_s29 }
  0x25   : > { %s169_s2 = sshll.u32 %s168_s30, 4 }
  0x26   : > { %170 = vsyncadd %s452_s27, %s169_s2  ;;  %p461_p12 = scmp.ne.s32.totalorder %s249_s29, 0  ;;  %s256_s4 = sshll.u32 %s416_s10, 4 }
  0x27   : > { %s173_s13 = scalar_lea.hbm %s513_s1, %s256_s4  ;;  %s175_s14 = sshll.u32 %s122_s26, 4  ;;  %s469_s14 = int_to_ptr.vmem [resolvable:$true] %s175_s14 }
  0x28   : > { %s177_s16 = sshll.u32 %s173_s13, 4  ;;  %s253_s18 = sshll.u32 %s522_s28, 7  ;;  %s471_s16 = int_to_ptr.hbm [resolvable:$true] %s177_s16 }
  0x29   : > { %s307_s19 = sshra.s32 %s469_s14, 4  ;;  %s309_s20 = sshrl.u32 %s253_s18, 4  ;;  %s308_s19 = int_to_ptr.vmem [resolvable:$true] %s307_s19 }
  0x2a   : > { %s314_s21 = scalar_lea.vmem %s308_s19, %s309_s20  ;;  %s382_s10 = smov [#allocation2]  }
  0x2b   : > { %p315_p13 = scmp.ne.s32.totalorder %s308_s19, %s314_s21  ;;  %s318_s22 = scalar_lea.vmem %s382_s10, 32 }
  0x2c   : > { %p320_p2 = scmp.lt.s32.totalorder %s318_s22, %s314_s21 }
  0x2d   : > { %p316_p0 = pnand %p315_p13, %p461_p12 }
  0x2f   : > { %p317_p1 = pneg %p316_p0 }
  0x31   : > { %p322_p3 = pnand %p320_p2, %p317_p1 }
  0x33   : > { %325 = shalt.err (!%p322_p3)
}
  0x34   : > { %s326_s23 = sshra.s32 %s471_s16, 4  ;;  %s337_s29 = scalar_lea.hbm %s513_s1, 24  ;;  %s327_s23 = int_to_ptr.hbm [resolvable:$true] %s326_s23 }
  0x35   : > { %s333_s24 = scalar_lea.hbm %s327_s23, %s309_s20  ;;  %p338_p8 = scmp.lt.s32.totalorder %s327_s23, %s513_s1 }
  0x36   : > { %p334_p4 = scmp.ne.s32.totalorder %s327_s23, %s333_s24  ;;  %p339_p9 = scmp.lt.s32.totalorder %s337_s29, %s333_s24 }
  0x38   : > { %p335_p5 = pnand %p334_p4, %p461_p12  ;;  %p340_p10 = por %p339_p9, %p338_p8 }
  0x3a   : > { %p336_p7 = pneg %p335_p5 }
  0x3c   : > { %p341_p11 = pnand %p340_p10, %p336_p7 }
  0x3e   : > { %344 = shalt.err (!%p341_p11)
}
  0x3f   : > { %s383_s4 = smov 128   ;;  %s384_s5 = smov 8  }
  0x40   : > { %183 = dma.vmem_to_hbm [thread:$0]  (%p461_p12), %s469_s14, %s253_s18, %s471_s16, %s452_s27, %s383_s4, %s383_s4, %s384_s5  }
  0x41 PF: > { %p272_p13 = scmp.ge.s32.totalorder %s380_s9, 2  ;;  %s192_s11 = sand.u32 1, %s368_s6  }
  0x42   : > { %s193_s13 = scalar_lea.sflag [#allocation3], %s192_s11 }
  0x43   : > { %p269_p0 = pnand %p272_p13, %p437_p6 }
  0x45   : > { %p270_p1 = pneg %p269_p0 }
  0x47   : > { %363 = dma.done.wait (%p270_p1), %s193_s13, 256  }
  0x48   : > { %365 = vsyncadd (%p270_p1), %s193_s13, 4294967040  ;;  %p11_p2 = scmp.ge.s32.totalorder %s420_s12, 4   ;;  %s517_s6 = smov %s372_s7 }
  0x49   : > { %s518_s7 = smov %s376_s8  ;;  %s519_s8 = smov %s431_s15 }
  0x4a   : > { %s520_s9 = smov %s420_s12  ;;  %13 = sbr.rel (!%p11_p2) target bundleno = 3 (0x3), region = 59 }
  0x4f   :  { %199 = vsyncpa [#allocation3], 1 }
  0x50   :  { %201 = vsyncpa [#allocation3 + $0x1], 1 }

</bundles_post_ra>
